<compile_context>
chip_gen: v7x
topology: tpu7x:2x2x1
jax: 0.10.0
libtpu: 0.0.40
codegen_flags: <defaults>
</compile_context>

<pallas_src>
import functools

import jax
import jax.numpy as jnp
from jax.experimental import pallas as pl
from jax.experimental.pallas import tpu as pltpu


def _round_up(n, m):
    return ((n + m - 1) // m) * m


def _pad2(a, shape, dtype):
    """Cast + zero-pad a 2-D array to `shape` (no-op if already that shape/dtype)."""
    a = a.astype(dtype)
    if a.shape == tuple(shape):
        return a
    out = jnp.zeros(shape, dtype)
    return out.at[: a.shape[0], : a.shape[1]].set(a)


# ----------------------------------------------------------------------------
# Hardware query + one-time capability probe (both cached).
# ----------------------------------------------------------------------------
@functools.lru_cache(maxsize=1)
def _vmem_capacity_bytes() -> int:
    try:
        info = pltpu.get_tpu_info()
        for attr in ("vmem_capacity_bytes", "vmem_bytes", "vmem_size_bytes"):
            cap = getattr(info, attr, None)
            if cap:
                return int(cap)
    except Exception:
        pass
    return 64 << 20  # conservative default: v7x per-TensorCore VMEM


_BUFFERED1_OK = None


def _buffered1_supported() -> bool:
    """Probe once (eagerly) whether pipeline_mode=pl.Buffered(1) lowers on this
    build.  Used to single-buffer VMEM-resident weights (halves their footprint)."""
    global _BUFFERED1_OK
    if _BUFFERED1_OK is None:
        try:
            def _copy(x_ref, o_ref):
                o_ref[...] = x_ref[...]

            out = pl.pallas_call(
                _copy,
                out_shape=jax.ShapeDtypeStruct((8, 128), jnp.float32),
                grid=(1,),
                in_specs=[pl.BlockSpec((8, 128), lambda i: (0, 0),
                                       pipeline_mode=pl.Buffered(1))],
                out_specs=pl.BlockSpec((8, 128), lambda i: (0, 0)),
            )(jnp.zeros((8, 128), jnp.float32))
            jax.block_until_ready(out)
            _BUFFERED1_OK = True
        except Exception:
            _BUFFERED1_OK = False
    return _BUFFERED1_OK


# ----------------------------------------------------------------------------
# Tile-plan selection (static Python ints; runs at trace time).
# ----------------------------------------------------------------------------
def _choose_plan(B, d_in_p, hid_p, d_out_p, single_buf_ok):
    """Pick batch tile (tb), hidden chunk (th) and vmem_limit per generation."""
    vmem_cap = _vmem_capacity_bytes()
    if vmem_cap >= (96 << 20):      # v5e / v6e: 128 MiB physical VMEM
        vmem_limit = 100 << 20
        tb_max = 1024
    else:                           # v7x: 64 MiB physical VMEM
        vmem_limit = int(vmem_cap * 0.85)
        tb_max = 512
    budget = int(vmem_limit * 0.8)  # headroom for Mosaic internal scratch

    tb = min(tb_max, _round_up(B, 8))
    if B >= 4 * 256:
        # Keep >= 4 batch blocks (2 TCs x double-buffered pipeline) on big batches.
        tb = max(256, min(tb, _round_up(-(-B // 4), 8)))

    # Hidden-chunk candidates: multiples of 128 that divide the padded hidden dim.
    th_candidates = [t for t in range(hid_p, 127, -128) if hid_p % t == 0]

    def vmem_use(tb_, th_):
        resident = th_ == hid_p
        wbuf = 1 if (resident and single_buf_ok) else 2
        w = wbuf * 2 * (d_in_p * th_ + th_ * d_out_p)          # bf16 weights
        bias = wbuf * 4 * th_ + 4 * d_out_p                    # f32 biases
        xb = 2 * 4 * tb_ * d_in_p                              # f32 x, dbl-buffered
        ob = 2 * 2 * tb_ * d_out_p                             # bf16 out, dbl-buffered
        acc = 0 if resident else 4 * tb_ * d_out_p             # f32 accumulator
        live = 6 * tb_ * th_ + 2 * tb_ * d_in_p + 4 * tb_ * d_out_p  # h/x/y temps
        return w + bias + xb + ob + acc + live

    while True:
        for th in th_candidates:
            if vmem_use(tb, th) <= budget:
                return tb, th, vmem_limit
        if tb > 128:
            tb = max(128, _round_up(tb // 2, 8))
        else:
            return 128, 128, vmem_limit   # minimum tiles; rely on vmem_limit


# ----------------------------------------------------------------------------
# Kernel: fused Linear -> ReLU -> Linear over a (batch tile, hidden chunk) grid.
# ----------------------------------------------------------------------------
def _mlp_fwd_kernel(x_ref, w1_ref, b1_ref, w2_ref, b2_ref, o_ref, *acc,
                    n_hid_blocks):
    x = x_ref[...].astype(w1_ref.dtype)             # f32 -> bf16 on the VPU
    h = jnp.dot(x, w1_ref[...], preferred_element_type=jnp.float32)   # MXU, f32 acc
    h = jnp.maximum(h + b1_ref[...], 0.0)           # bias + ReLU in f32 (v5e-safe)
    y = jnp.dot(h.astype(w2_ref.dtype), w2_ref[...],
                preferred_element_type=jnp.float32)

    if n_hid_blocks == 1:
        # Weights fully VMEM-resident: lane-dense bf16 store of the tile.
        o_ref[...] = (y + b2_ref[...]).astype(o_ref.dtype)
    else:
        # Hidden dimension tiled: accumulate partial products in f32 scratch.
        acc_ref, = acc
        k = pl.program_id(1)

        @pl.when(k == 0)
        def _init():
            acc_ref[...] = jnp.zeros_like(acc_ref)

        acc_ref[...] += y

        @pl.when(k == n_hid_blocks - 1)
        def _finalize():
            o_ref[...] = (acc_ref[...] + b2_ref[...]).astype(o_ref.dtype)


@functools.partial(jax.jit, static_argnames=("out_features", "use_buffered1"))
def _mlp_forward_impl(x, w1, b1, w2, b2, *, out_features, use_buffered1):
    B, d_in = x.shape
    hidden = w1.shape[1]
    d_out = w2.shape[1]

    d_in_p = _round_up(d_in, 128)
    hid_p = _round_up(hidden, 128)
    d_out_p = _round_up(d_out, 128)

    tb, th, vmem_limit = _choose_plan(B, d_in_p, hid_p, d_out_p, use_buffered1)
    b_p = _round_up(B, tb)
    nb = b_p // tb
    n_hid = hid_p // th
    resident = n_hid == 1

    # x keeps its input dtype (f32); the bf16 cast happens inside the kernel,
    # so there is no extra wrapper-side HBM read/write pass for activations.
    xp = _pad2(x, (b_p, d_in_p), x.dtype)
    # Weight pads/casts are no-ops when the caller (ToyMLP) pre-pads at init.
    w1p = _pad2(w1, (d_in_p, hid_p), jnp.bfloat16)
    b1p = _pad2(b1, (1, hid_p), jnp.float32)
    w2p = _pad2(w2, (hid_p, d_out_p), jnp.bfloat16)
    b2p = _pad2(b2, (1, d_out_p), jnp.float32)

    # Single-buffer VMEM-resident weights/biases (constant index_map) when the
    # installed Pallas supports pipeline_mode; halves their VMEM footprint.
    wmode = {}
    if resident and use_buffered1:
        wmode = dict(pipeline_mode=pl.Buffered(1))

    in_specs = [
        pl.BlockSpec((tb, d_in_p), lambda i, k: (i, 0)),            # x: batch-tiled
        pl.BlockSpec((d_in_p, th), lambda i, k: (0, k), **wmode),   # w1 chunk
        pl.BlockSpec((1, th), lambda i, k: (0, k), **wmode),        # b1 chunk
        pl.BlockSpec((th, d_out_p), lambda i, k: (k, 0), **wmode),  # w2 chunk
        pl.BlockSpec((1, d_out_p), lambda i, k: (0, 0), **wmode),   # b2
    ]
    out_spec = pl.BlockSpec((tb, d_out_p), lambda i, k: (i, 0))
    scratch = [] if resident else [pltpu.VMEM((tb, d_out_p), jnp.float32)]

    flops = 2 * b_p * d_in_p * hid_p + 2 * b_p * hid_p * d_out_p
    w_bytes = 2 * (d_in_p * hid_p + hid_p * d_out_p)
    bytes_accessed = (b_p * d_in_p * xp.dtype.itemsize
                      + (1 if resident else nb) * w_bytes
                      + 4 * (hid_p + d_out_p)
                      + b_p * d_out_p * 2)

    out_padded = pl.pallas_call(
        functools.partial(_mlp_fwd_kernel, n_hid_blocks=n_hid),
        out_shape=jax.ShapeDtypeStruct((b_p, d_out_p), jnp.bfloat16),
        grid_spec=pltpu.PrefetchScalarGridSpec(
            num_scalar_prefetch=0,
            grid=(nb, n_hid),
            in_specs=in_specs,
            out_specs=out_spec,
            scratch_shapes=scratch,
        ),
        compiler_params=pltpu.CompilerParams(
            dimension_semantics=("parallel", "arbitrary"),
            vmem_limit_bytes=int(vmem_limit),
        ),
        cost_estimate=pl.CostEstimate(
            flops=flops, transcendentals=0, bytes_accessed=bytes_accessed),
    )(xp, w1p, b1p, w2p, b2p)

    return out_padded[:B, :out_features]


def mlp_forward_pallas(x, w1, b1, w2, b2, out_features=None):
    """y = relu(x @ w1 + b1) @ w2 + b2, fused in one Pallas TPU kernel."""
    if out_features is None:
        out_features = w2.shape[1]
    return _mlp_forward_impl(x, w1, b1, w2, b2,
                             out_features=int(out_features),
                             use_buffered1=_buffered1_supported())


# ----------------------------------------------------------------------------
# Wrapped module + DDP wrapper (forward-path parity with the PyTorch spec).
# ----------------------------------------------------------------------------
class ToyMLP:
    """Linear(d_in, hidden) -> ReLU -> Linear(hidden, d_out), bf16 weights."""

    def __init__(self, key, d_in, hidden, d_out):
        k1, k2, k3, k4 = jax.random.split(key, 4)
        self.d_out = d_out
        self.w1 = (jax.random.normal(k1, (d_in, hidden), jnp.float32)
                   * (2.0 / d_in) ** 0.5).astype(jnp.bfloat16)
        self.b1 = jax.random.normal(k2, (1, hidden), jnp.float32) * 0.01
        self.w2 = (jax.random.normal(k3, (hidden, d_out), jnp.float32)
                   * (2.0 / hidden) ** 0.5).astype(jnp.bfloat16)
        self.b2 = jax.random.normal(k4, (1, d_out), jnp.float32) * 0.01
        # One-time pad/cast of static parameters to TPU-friendly (128-lane)
        # shapes: no per-call HBM pad/cast passes inside the jitted forward.
        d_in_p, hid_p, d_out_p = (_round_up(d_in, 128), _round_up(hidden, 128),
                                  _round_up(d_out, 128))
        self._w1p = _pad2(self.w1, (d_in_p, hid_p), jnp.bfloat16)
        self._b1p = _pad2(self.b1, (1, hid_p), jnp.float32)
        self._w2p = _pad2(self.w2, (hid_p, d_out_p), jnp.bfloat16)
        self._b2p = _pad2(self.b2, (1, d_out_p), jnp.float32)

    def parameters(self):
        return [self.w1, self.b1, self.w2, self.b2]

    def __call__(self, x):
        return mlp_forward_pallas(x, self._w1p, self._b1p, self._w2p, self._b2p,
                                  out_features=self.d_out)


class DDPOverlapIndividualParameters:
    """JAX/Pallas analogue of the PyTorch DDP wrapper.

    forward(*args) delegates to the wrapped module (hot path = Pallas kernel).
    """

    def __init__(self, module: ToyMLP, world_size: int = 1):
        self.module = module
        self.world_size = world_size
        self.handles = []
        # TODO(synk): dist.broadcast(param, src=0) at init and the per-parameter
        # async all_reduce gradient hooks are multi-process/backward-only (would
        # use pltpu.make_async_remote_copy + pl.semaphore_* across devices);
        # they do not affect forward semantics and are no-ops at world_size=1.

    def forward(self, *args, **kwargs):
        return self.module(*args, **kwargs)

    __call__ = forward

    def finish_gradient_synchronization(self, grads=None):
        # Forward-pass irrelevant; API parity: average grads over world_size.
        self.handles.clear()
        if grads is None:
            return None
        return [g / self.world_size for g in grads]


# ----------------------------------------------------------------------------
# Pure-JAX reference (same bf16-operand / f32-accumulate recipe as the kernel).
# ----------------------------------------------------------------------------
def _ref_forward(x, w1, b1, w2, b2):
    xb = x.astype(jnp.bfloat16)
    h = jnp.dot(xb, w1.astype(jnp.bfloat16),
                preferred_element_type=jnp.float32) + b1.astype(jnp.float32)
    h = jnp.maximum(h, 0.0)
    y = jnp.dot(h.astype(jnp.bfloat16), w2.astype(jnp.bfloat16),
                preferred_element_type=jnp.float32) + b2.astype(jnp.float32)
    return y


if __name__ == "__main__":
    key = jax.random.PRNGKey(0)
    k_param, k_x, k_param2, k_x2 = jax.random.split(key, 4)

    # Case 1: lane/MXU-aligned shapes (weights fully VMEM-resident fast path).
    batch, d_in, hidden, d_out = 64, 128, 256, 128
    model = ToyMLP(k_param, d_in, hidden, d_out)
    ddp = DDPOverlapIndividualParameters(model, world_size=1)
    x = jax.random.normal(k_x, (batch, d_in), jnp.float32)

    out = jax.block_until_ready(ddp(x))
    ref = _ref_forward(x, model.w1, model.b1, model.w2, model.b2)
    assert out.shape == (batch, d_out)
    assert jnp.allclose(out.astype(jnp.float32), ref,
                        atol=2e-2, rtol=2e-2), "aligned case mismatch"

    # Case 2: small, unaligned shapes exercise the pad/slice path.
    model2 = ToyMLP(k_param2, 32, 32, 16)
    ddp2 = DDPOverlapIndividualParameters(model2, world_size=1)
    x2 = jax.random.normal(k_x2, (8, 32), jnp.float32)

    out2 = jax.block_until_ready(ddp2(x2))
    ref2 = _ref_forward(x2, model2.w1, model2.b1, model2.w2, model2.b2)
    assert out2.shape == (8, 16)
    assert jnp.allclose(out2.astype(jnp.float32), ref2,
                        atol=2e-2, rtol=2e-2), "padded case mismatch"

    print("KERNEL_OK")
</pallas_src>

<mosaic_0001>
module attributes {stable_mosaic.version = 11 : i64} {
  func.func @_copy(%arg0: i32, %arg1: memref<8x128xf32, #tpu.memory_space<vmem>>, %arg2: memref<8x128xf32, #tpu.memory_space<vmem>>) attributes {dimension_semantics = [#tpu.dimension_semantics<arbitrary>], iteration_bounds = array<i64: 1>, scalar_prefetch = 0 : i64, scratch_operands = 0 : i64, tpu.core_type = #tpu.core_type<tc>, window_params = [{pipeline_mode = #tpu.pipeline_mode<synchronous>, transform_indices = @transform_0, window_bounds = array<i64: 8, 128>}, {pipeline_mode = #tpu.pipeline_mode<synchronous>, transform_indices = @transform_1, window_bounds = array<i64: 8, 128>}]} {
    %c0 = arith.constant 0 : index
    %c0_0 = arith.constant 0 : index
    %0 = vector.load %arg1[%c0, %c0_0] : memref<8x128xf32, #tpu.memory_space<vmem>>, vector<8x128xf32>
    %c0_1 = arith.constant 0 : index
    %c0_2 = arith.constant 0 : index
    %1 = vector.load %arg2[%c0_1, %c0_2] : memref<8x128xf32, #tpu.memory_space<vmem>>, vector<8x128xf32>
    tpu.vector_store %arg2[%c0_1, %c0_2], %0 {strides = array<i32>} : memref<8x128xf32, #tpu.memory_space<vmem>>, vector<8x128xf32>,
    return
  }
  func.func @transform_0(%arg0: i32) -> (i32, i32) {
    %c0_i32 = arith.constant 0 : i32
    %c0_i32_0 = arith.constant 0 : i32
    %c0_i32_1 = arith.constant 0 : i32
    return %c0_i32, %c0_i32_0 : i32, i32
  }
  func.func @transform_1(%arg0: i32) -> (i32, i32) {
    %c0_i32 = arith.constant 0 : i32
    %c0_i32_0 = arith.constant 0 : i32
    %c0_i32_1 = arith.constant 0 : i32
    return %c0_i32, %c0_i32_0 : i32, i32
  }
}

module attributes {stable_mosaic.version = 11 : i64} {
  func.func @_mlp_fwd_kernel(%arg0: i32, %arg1: i32, %arg2: memref<64x128xf32, #tpu.memory_space<vmem>>, %arg3: memref<128x256xbf16, #tpu.memory_space<vmem>>, %arg4: memref<1x256xf32, #tpu.memory_space<vmem>>, %arg5: memref<256x128xbf16, #tpu.memory_space<vmem>>, %arg6: memref<1x128xf32, #tpu.memory_space<vmem>>, %arg7: memref<64x128xbf16, #tpu.memory_space<vmem>>) attributes {dimension_semantics = [#tpu.dimension_semantics<parallel>, #tpu.dimension_semantics<arbitrary>], iteration_bounds = array<i64: 1, 1>, scalar_prefetch = 0 : i64, scratch_operands = 0 : i64, tpu.core_type = #tpu.core_type<tc>, window_params = [{transform_indices = @transform_0, window_bounds = array<i64: 64, 128>}, {transform_indices = @transform_1, window_bounds = array<i64: 128, 256>}, {transform_indices = @transform_2, window_bounds = array<i64: 1, 256>}, {transform_indices = @transform_3, window_bounds = array<i64: 256, 128>}, {pipeline_mode = #tpu.pipeline_mode<synchronous>, transform_indices = @transform_4, window_bounds = array<i64: 1, 128>}, {transform_indices = @transform_5, window_bounds = array<i64: 64, 128>}]} {
    %c0 = arith.constant 0 : index
    %c0_0 = arith.constant 0 : index
    %0 = vector.load %arg2[%c0, %c0_0] : memref<64x128xf32, #tpu.memory_space<vmem>>, vector<64x128xf32>
    %1 = arith.truncf %0 : vector<64x128xf32> to vector<64x128xbf16>
    %c0_1 = arith.constant 0 : index
    %c0_2 = arith.constant 0 : index
    %2 = vector.load %arg3[%c0_1, %c0_2] : memref<128x256xbf16, #tpu.memory_space<vmem>>, vector<128x256xbf16>
    %cst = arith.constant dense<0.000000e+00> : vector<64x256xf32>
    %3 = tpu.matmul %1, %2, %cst {dimension_numbers = #tpu.dot_dimension_numbers<[1], [0], [0], [1], [0, 0, 1, 1], [], []>} : vector<64x128xbf16>, vector<128x256xbf16>, vector<64x256xf32> -> vector<64x256xf32>
    %c0_3 = arith.constant 0 : index
    %c0_4 = arith.constant 0 : index
    %4 = vector.load %arg4[%c0_3, %c0_4] : memref<1x256xf32, #tpu.memory_space<vmem>>, vector<1x256xf32>
    %5 = vector.broadcast %4 : vector<1x256xf32> to vector<64x256xf32>
    %6 = arith.addf %3, %5 : vector<64x256xf32>
    %cst_5 = arith.constant 0.000000e+00 : f32
    %7 = vector.broadcast %cst_5 : f32 to vector<64x256xf32>
    %8 = arith.maximumf %6, %7 : vector<64x256xf32>
    %9 = arith.truncf %8 : vector<64x256xf32> to vector<64x256xbf16>
    %c0_6 = arith.constant 0 : index
    %c0_7 = arith.constant 0 : index
    %10 = vector.load %arg5[%c0_6, %c0_7] : memref<256x128xbf16, #tpu.memory_space<vmem>>, vector<256x128xbf16>
    %cst_8 = arith.constant dense<0.000000e+00> : vector<64x128xf32>
    %11 = tpu.matmul %9, %10, %cst_8 {dimension_numbers = #tpu.dot_dimension_numbers<[1], [0], [0], [1], [0, 0, 1, 1], [], []>} : vector<64x256xbf16>, vector<256x128xbf16>, vector<64x128xf32> -> vector<64x128xf32>
    %c0_9 = arith.constant 0 : index
    %c0_10 = arith.constant 0 : index
    %12 = vector.load %arg6[%c0_9, %c0_10] : memref<1x128xf32, #tpu.memory_space<vmem>>, vector<1x128xf32>
    %13 = vector.broadcast %12 : vector<1x128xf32> to vector<64x128xf32>
    %14 = arith.addf %11, %13 : vector<64x128xf32>
    %15 = arith.truncf %14 : vector<64x128xf32> to vector<64x128xbf16>
    %c0_11 = arith.constant 0 : index
    %c0_12 = arith.constant 0 : index
    %16 = vector.load %arg7[%c0_11, %c0_12] : memref<64x128xbf16, #tpu.memory_space<vmem>>, vector<64x128xbf16>
    tpu.vector_store %arg7[%c0_11, %c0_12], %15 {strides = array<i32>} : memref<64x128xbf16, #tpu.memory_space<vmem>>, vector<64x128xbf16>,
    return
  }
  func.func @transform_0(%arg0: i32, %arg1: i32) -> (i32, i32) {
    %c0_i32 = arith.constant 0 : i32
    %c0_i32_0 = arith.constant 0 : i32
    return %arg0, %c0_i32 : i32, i32
  }
  func.func @transform_1(%arg0: i32, %arg1: i32) -> (i32, i32) {
    %c0_i32 = arith.constant 0 : i32
    %c0_i32_0 = arith.constant 0 : i32
    return %c0_i32, %arg1 : i32, i32
  }
  func.func @transform_2(%arg0: i32, %arg1: i32) -> (i32, i32) {
    %c0_i32 = arith.constant 0 : i32
    %c0_i32_0 = arith.constant 0 : i32
    return %c0_i32, %arg1 : i32, i32
  }
  func.func @transform_3(%arg0: i32, %arg1: i32) -> (i32, i32) {
    %c0_i32 = arith.constant 0 : i32
    %c0_i32_0 = arith.constant 0 : i32
    return %arg1, %c0_i32 : i32, i32
  }
  func.func @transform_4(%arg0: i32, %arg1: i32) -> (i32, i32) {
    %c0_i32 = arith.constant 0 : i32
    %c0_i32_0 = arith.constant 0 : i32
    %c0_i32_1 = arith.constant 0 : i32
    return %c0_i32, %c0_i32_0 : i32, i32
  }
  func.func @transform_5(%arg0: i32, %arg1: i32) -> (i32, i32) {
    %c0_i32 = arith.constant 0 : i32
    %c0_i32_0 = arith.constant 0 : i32
    return %arg0, %c0_i32 : i32, i32
  }
}

</mosaic_0001>

<bundles_post_ra>
// kernel: tpu_custom_call.1
= control target key start
LH: loop header
LB: loop body
LE: loop exit
PB: predicated region body
PF: predicated region fallthrough
CT: control target
= control target key end

     0   :  { %6 = vsyncpa [#allocation3], 0  ;;  %s124_s0 = inlined_call_operand.hbm [shape: f32[8,128], index: 0, kind: input, shape index: {}]   ;;  %s125_s1 = inlined_call_operand.hbm [shape: f32[8,128], index: 1, kind: output, shape index: {}]  }
   0x1   :  { %7 = vsyncpa [#allocation4], 0  ;;  %s88_s6 = smov [#allocation2]   ;;  %s40_s10 = scalar_lea.hbm %s124_s0, 128 }
   0x2   :  { %s14_s7 = sshll.u32 %s88_s6, 4  ;;  %p41_p0 = scmp.ne.s32.totalorder %s124_s0, %s40_s10  ;;  %s15_s7 = int_to_ptr.vmem [resolvable:$true] %s14_s7 }
   0x3   :  { %p44_p1 = scmp.lt.u32.totalorder %s40_s10, %s124_s0 }
   0x5   :  { %p46_p2 = pnand %p44_p1, %p41_p0 }
   0x7   :  { %49 = shalt.err (!%p46_p2)
}
   0x8   :  { %s50_s15 = scalar_lea.vmem %s15_s7, 128  ;;  %p55_p4 = scmp.lt.s32.totalorder %s15_s7, %s15_s7 }
   0x9   :  { %p51_p3 = scmp.ne.s32.totalorder %s15_s7, %s50_s15  ;;  %p56_p5 = scmp.lt.s32.totalorder %s50_s15, %s50_s15 }
   0xb   :  { %p57_p6 = por %p56_p5, %p55_p4 }
   0xd   :  { %p58_p7 = pnand %p57_p6, %p51_p3 }
   0xf   :  { %61 = shalt.err (!%p58_p7)
}
  0x10   :  { %17 = dma.hbm_to_vmem [thread:$0]  %s124_s0, 128, %s15_s7, [#allocation3]  }
  0x11   :  { %84 = dma.done.wait [#allocation3], 128  }
  0x12   :  { %85 = vsyncadd [#allocation3], 4294967168  ;;  %s89_s18 = smov [#allocation5]   ;;  %v21_v0 = vld [vmem:[#allocation2] sm:$0xff] }
  0x13   :  { %s29_s19 = sshll.u32 %s89_s18, 4  ;;  %22 = vst [vmem:[#allocation5] sm:$0xff] %v21_v0  ;;  %s30_s19 = int_to_ptr.vmem [resolvable:$true] %s29_s19 }
  0x14   :  { %s62_s20 = scalar_lea.vmem %s30_s19, 128  ;;  %p67_p9 = scmp.lt.s32.totalorder %s30_s19, %s30_s19 }
  0x15   :  { %p63_p8 = scmp.ne.s32.totalorder %s30_s19, %s62_s20  ;;  %p68_p10 = scmp.lt.s32.totalorder %s62_s20, %s62_s20 }
  0x17   :  { %p69_p11 = por %p68_p10, %p67_p9 }
  0x19   :  { %p70_p12 = pnand %p69_p11, %p63_p8 }
  0x1b   :  { %73 = shalt.err (!%p70_p12)
}
  0x1c   :  { %s74_s23 = scalar_lea.hbm %s125_s1, 128 }
  0x1d   :  { %p75_p13 = scmp.ne.s32.totalorder %s125_s1, %s74_s23  ;;  %p78_p0 = scmp.lt.u32.totalorder %s74_s23, %s125_s1 }
  0x1f   :  { %p80_p1 = pnand %p78_p0, %p75_p13 }
  0x21   :  { %83 = shalt.err (!%p80_p1)
}
  0x22   :  { %32 = dma.vmem_to_hbm [thread:$0]  %s30_s19, 128, %s125_s1, [#allocation4]  }
  0x23   :  { %86 = dma.done.wait [#allocation4], 128  }
  0x24   :  { %87 = vsyncadd [#allocation4], 4294967168 }
  0x25   :  { %36 = vsyncpa [#allocation3], 1 }
  0x26   :  { %37 = vsyncpa [#allocation4], 1 }

// kernel: _mlp_forward_impl.1
= control target key start
LH: loop header
LB: loop body
LE: loop exit
PB: predicated region body
PF: predicated region fallthrough
CT: control target
= control target key end

     0   :  { %10 = vsyncpa [#allocation3], 0  ;;  %s903_s0 = inlined_call_operand.hbm [shape: f32[64,128], index: 0, kind: input, shape index: {}]   ;;  %s904_s1 = inlined_call_operand.hbm [shape: bf16[128,256], index: 1, kind: input, shape index: {}]   ;;  %s905_s2 = inlined_call_operand.vmem [shape: f32[1,256], index: 2, kind: input, shape index: {}]   ;;  %s906_s3 = inlined_call_operand.hbm [shape: bf16[256,128], index: 3, kind: input, shape index: {}]   ;;  %s907_s4 = inlined_call_operand.vmem [shape: f32[1,128], index: 4, kind: input, shape index: {}]   ;;  %s908_s5 = inlined_call_operand.hbm [shape: bf16[64,128], index: 5, kind: output, shape index: {}]  }
   0x1   :  { %11 = vsyncpa [#allocation6], 0 }
   0x2   :  { %12 = vsyncpa [#allocation4], 0  ;;  %s793_s18 = smov [#allocation5]   ;;  %s794_s20 = smov [#allocation2]  }
   0x3   :  { %s30_s19 = sshll.u32 %s793_s18, 4  ;;  %s18_s21 = sshll.u32 %s794_s20, 4  ;;  %s31_s19 = int_to_ptr.vmem [resolvable:$true] %s30_s19  ;;  %s832_s21 = int_to_ptr.vmem [resolvable:$true] %s18_s21 }
   0x4   :  { %s699_s24 = scalar_lea.hbm %s904_s1, 2048 }
   0x5   :  { %p700_p0 = scmp.ne.s32.totalorder %s904_s1, %s699_s24  ;;  %p703_p1 = scmp.lt.u32.totalorder %s699_s24, %s904_s1 }
   0x7   :  { %p705_p2 = pnand %p703_p1, %p700_p0 }
   0x9   :  { %708 = shalt.err (!%p705_p2)
}
   0xa   :  { %s709_s29 = scalar_lea.vmem %s31_s19, 2048  ;;  %p714_p4 = scmp.lt.s32.totalorder %s31_s19, %s31_s19 }
   0xb   :  { %p710_p3 = scmp.ne.s32.totalorder %s31_s19, %s709_s29  ;;  %p715_p5 = scmp.lt.s32.totalorder %s709_s29, %s709_s29 }
   0xd   :  { %p716_p6 = por %p715_p5, %p714_p4 }
   0xf   :  { %p717_p7 = pnand %p716_p6, %p710_p3 }
  0x11   :  { %720 = shalt.err (!%p717_p7)
}
  0x12   :  { %s795_s30 = smov 128   ;;  %s796_s6 = smov 8  }
  0x13   :  { %36 = dma.hbm_to_vmem [thread:$0]  %s904_s1, 2048, %s31_s19, [#allocation6], %s795_s30, %s795_s30, %s796_s6  }
  0x14   :  { %s721_s11 = scalar_lea.hbm %s903_s0, 1024 }
  0x15   :  { %p722_p8 = scmp.ne.s32.totalorder %s903_s0, %s721_s11  ;;  %p725_p9 = scmp.lt.u32.totalorder %s721_s11, %s903_s0 }
  0x17   :  { %p727_p10 = pnand %p725_p9, %p722_p8 }
  0x19   :  { %730 = shalt.err (!%p727_p10)
}
  0x1a   :  { %s731_s16 = scalar_lea.vmem %s832_s21, 1024  ;;  %p736_p12 = scmp.lt.s32.totalorder %s832_s21, %s832_s21 }
  0x1b   :  { %p732_p11 = scmp.ne.s32.totalorder %s832_s21, %s731_s16  ;;  %p737_p13 = scmp.lt.s32.totalorder %s731_s16, %s731_s16 }
  0x1d   :  { %p738_p0 = por %p737_p13, %p736_p12 }
  0x1f   :  { %p739_p1 = pnand %p738_p0, %p732_p11 }
  0x21   :  { %742 = shalt.err (!%p739_p1)
}
  0x22   :  { %24 = dma.hbm_to_vmem [thread:$0]  %s903_s0, 1024, %s832_s21, [#allocation3], %s795_s30, %s795_s30, %s796_s6  }
  0x23   :  { %s797_s18 = smov [#allocation7]   ;;  %s743_s23 = scalar_lea.hbm %s906_s3, 2048 }
  0x24   :  { %s44_s19 = sshll.u32 %s797_s18, 4  ;;  %p744_p2 = scmp.ne.s32.totalorder %s906_s3, %s743_s23  ;;  %s45_s19 = int_to_ptr.vmem [resolvable:$true] %s44_s19 }
  0x25   :  { %p747_p3 = scmp.lt.u32.totalorder %s743_s23, %s906_s3 }
  0x27   :  { %p749_p4 = pnand %p747_p3, %p744_p2 }
  0x29   :  { %752 = shalt.err (!%p749_p4)
}
  0x2a   :  { %s753_s28 = scalar_lea.vmem %s45_s19, 2048  ;;  %p758_p6 = scmp.lt.s32.totalorder %s45_s19, %s45_s19 }
  0x2b   :  { %p754_p5 = scmp.ne.s32.totalorder %s45_s19, %s753_s28  ;;  %p759_p7 = scmp.lt.s32.totalorder %s753_s28, %s753_s28 }
  0x2d   :  { %p760_p8 = por %p759_p7, %p758_p6 }
  0x2f   :  { %p761_p9 = pnand %p760_p8, %p754_p5 }
  0x31   :  { %764 = shalt.err (!%p761_p9)
}
  0x32   :  { %s798_s0 = smov 64   ;;  %s799_s21 = smov 4  }
  0x33   :  { %50 = dma.hbm_to_vmem [thread:$0]  %s906_s3, 2048, %s45_s19, [#allocation6], %s798_s0, %s798_s0, %s799_s21  }
  0x34   :  { %787 = dma.done.wait [#allocation3], 1024  }
  0x35   :  { %788 = vsyncadd [#allocation3], 4294966272 }
  0x36   :  { %789 = dma.done.wait [#allocation6], 4096  }
  0x37   :  { %790 = vsyncadd [#allocation6], 4294963200  ;;  %v800_v0 = vmov 0   ;;  %v659_v1 = vld [vmem:[#allocation5 + $0x4] ss:$8 sps:$4 sm:$0xff]   ;;  %v687_v16 = vld [vmem:[#allocation7 + $0x50] sm:$0xff]   ;;  %v93_v45 = vlaneseq }
  0x38   :  { %215 = vmatprep.mubr.bf16.mxu0 %v800_v0  ;;  %v661_v2 = vld [vmem:[#allocation5] ss:$8 sps:$4 sm:$0xff]   ;;  %183 = vmatprep.subr.bf16.mxu0 %v659_v1  ;;  %v662_v3 = vld [vmem:[#allocation5 + $0x14] ss:$8 sps:$4 sm:$0xff]   ;;  %v664_v4 = vld [vmem:[#allocation5 + $0x10] ss:$8 sps:$4 sm:$0xff]  }
  0x39   :  { %184 = vmatpush1.bf16.msra.mxu0 %v661_v2  ;;  %v665_v5 = vld [vmem:[#allocation5 + $0x24] ss:$8 sps:$4 sm:$0xff]   ;;  %v667_v6 = vld [vmem:[#allocation5 + $0x20] ss:$8 sps:$4 sm:$0xff]   ;;  %v668_v7 = vld [vmem:[#allocation5 + $0x34] ss:$8 sps:$4 sm:$0xff]  }
  0x3a   :  { %185 = vmatprep.subr.bf16.mxu0 %v662_v3  ;;  %v670_v8 = vld [vmem:[#allocation5 + $0x30] ss:$8 sps:$4 sm:$0xff]   ;;  %v671_v9 = vld [vmem:[#allocation5 + $0x44] ss:$8 sps:$4 sm:$0xff]   ;;  %v673_v10 = vld [vmem:[#allocation5 + $0x40] ss:$8 sps:$4 sm:$0xff]  }
  0x3b   :  { %v674_v11 = vld [vmem:[#allocation5 + $0x54] ss:$8 sps:$4 sm:$0xff]   ;;  %v683_v12 = vld [vmem:[#allocation7 + $0x40] sm:$0xff]   ;;  %v685_v14 = vld [vmem:[#allocation7 + $0x48] sm:$0xff]   ;;  %v94_v46 = vshrl.u32 %v93_v45, 7 }
  0x3c   :  { %v684_v13 = vld [vmem:[#allocation7] sm:$0xff]   ;;  %610 = vmatprep.subr.bf16.mxu1 %v683_v12  ;;  %v686_v15 = vld [vmem:[#allocation7 + $0x8] sm:$0xff]   ;;  %v676_v17 = vld [vmem:[#allocation5 + $0x50] ss:$8 sps:$4 sm:$0xff]  }
  0x3d   :  { %186 = vmatpush1.bf16.msra.mxu0 %v664_v4  ;;  %611 = vmatpush3.bf16.msra.mxu1 %v684_v13  ;;  %v677_v18 = vld [vmem:[#allocation5 + $0x64] ss:$8 sps:$4 sm:$0xff]   ;;  %v679_v19 = vld [vmem:[#allocation5 + $0x60] ss:$8 sps:$4 sm:$0xff]   ;;  %v688_v20 = vld [vmem:[#allocation7 + $0x10] sm:$0xff]   ;;  %v95_v47 = vsub.s32 0, %v94_v46 }
  0x3e   :  { %187 = vmatprep.subr.bf16.mxu0 %v665_v5  ;;  %612 = vmatprep.subr.bf16.mxu1 %v685_v14  ;;  %v689_v21 = vld [vmem:[#allocation7 + $0x58] sm:$0xff]   ;;  %v691_v24 = vld [vmem:[#allocation7 + $0x60] sm:$0xff]   ;;  %v64_v27 = vld [vmem:[#allocation2 + $0x8] sm:$0xff]  ;;  %v99_v49 = vsub.s32 1, %v94_v46 }
  0x3f   :  { %v680_v22 = vld [vmem:[#allocation5 + $0x74] ss:$8 sps:$4 sm:$0xff]   ;;  %v682_v25 = vld [vmem:[#allocation5 + $0x70] ss:$8 sps:$4 sm:$0xff]   ;;  %v63_v26 = vld [vmem:[#allocation2] sm:$0xff] }
  0x40   :  { %v690_v23 = vld [vmem:[#allocation7 + $0x18] sm:$0xff]   ;;  %v692_v28 = vld [vmem:[#allocation7 + $0x20] sm:$0xff]   ;;  %v71_v29 = vpack.c.bf16 %v64_v27, %v63_v26  ;;  %v693_v30 = vld [vmem:[#allocation7 + $0x68] sm:$0xff]  }
  0x41   :  { %188 = vmatpush1.bf16.msra.mxu0 %v667_v6  ;;  %613 = vmatpush3.bf16.msra.mxu1 %v686_v15  ;;  %v65_v31 = vld [vmem:[#allocation2 + $0x10] sm:$0xff]  ;;  %v66_v32 = vld [vmem:[#allocation2 + $0x18] sm:$0xff]  ;;  %v67_v34 = vld [vmem:[#allocation2 + $0x20] sm:$0xff] }
  0x42   :  { %189 = vmatprep.subr.bf16.mxu0 %v668_v7  ;;  %614 = vmatprep.subr.bf16.mxu1 %v687_v16  ;;  %v72_v33 = vpack.c.bf16 %v66_v32, %v65_v31  ;;  %v68_v35 = vld [vmem:[#allocation2 + $0x28] sm:$0xff]  ;;  %v69_v37 = vld [vmem:[#allocation2 + $0x30] sm:$0xff]  ;;  %v70_v38 = vld [vmem:[#allocation2 + $0x38] sm:$0xff] }
  0x43   :  { %v73_v36 = vpack.c.bf16 %v68_v35, %v67_v34  ;;  %v74_v39 = vpack.c.bf16 %v70_v38, %v69_v37  ;;  %v694_v40 = vld [vmem:[#allocation7 + $0x28] sm:$0xff]   ;;  %v695_v41 = vld [vmem:[#allocation7 + $0x70] sm:$0xff]   ;;  %v697_v43 = vld [vmem:[#allocation7 + $0x78] sm:$0xff]  }
  0x44   :  { %v696_v42 = vld [vmem:[#allocation7 + $0x30] sm:$0xff]   ;;  %v698_v44 = vld [vmem:[#allocation7 + $0x38] sm:$0xff]   ;;  %v91_v48 = vld [vmem:[%s905_s2] sm:$0x3] }
  0x45   :  { %190 = vmatpush1.bf16.msra.mxu0 %v670_v8  ;;  %615 = vmatpush3.bf16.msra.mxu1 %v688_v20  ;;  %v96_v50 = vrot.slane %v91_v48, %v95_v47  ;;  %v100_v51 = vrot.slane %v91_v48, %v99_v49  ;;  %v554_v48 = vld [vmem:[%s907_s4] ss:$0 sm:$0xff]  ;;  %s801_s4 = smov [#allocation8]  }
  0x46   :  { %191 = vmatprep.subr.bf16.mxu0 %v671_v9  ;;  %616 = vmatprep.subr.bf16.mxu1 %v689_v21  ;;  %s525_s8 = sshll.u32 %s801_s4, 4  ;;  %s526_s8 = int_to_ptr.vmem [resolvable:$true] %s525_s8 }
  0x47   :  { %s765_s9 = scalar_lea.vmem %s526_s8, 512  ;;  %p770_p11 = scmp.lt.s32.totalorder %s526_s8, %s526_s8 }
  0x48   :  { %p766_p10 = scmp.ne.s32.totalorder %s526_s8, %s765_s9  ;;  %p771_p12 = scmp.lt.s32.totalorder %s765_s9, %s765_s9 }
  0x49   :  { %192 = vmatpush1.bf16.msra.mxu0 %v673_v10  ;;  %617 = vmatpush3.bf16.msra.mxu1 %v690_v23 }
  0x4a   :  { %193 = vmatprep.subr.bf16.mxu0 %v674_v11  ;;  %618 = vmatprep.subr.bf16.mxu1 %v691_v24  ;;  %p772_p13 = por %p771_p12, %p770_p11 }
  0x4c   :  { %p773_p0 = pnand %p772_p13, %p766_p10 }
  0x4d   :  { %194 = vmatpush1.bf16.msra.mxu0 %v676_v17  ;;  %619 = vmatpush3.bf16.msra.mxu1 %v692_v28 }
  0x4e   :  { %195 = vmatprep.subr.bf16.mxu0 %v677_v18  ;;  %620 = vmatprep.subr.bf16.mxu1 %v693_v30 }
  0x51   :  { %196 = vmatpush1.bf16.msra.mxu0 %v679_v19  ;;  %621 = vmatpush3.bf16.msra.mxu1 %v694_v40 }
  0x52   :  { %197 = vmatprep.subr.bf16.mxu0 %v680_v22  ;;  %622 = vmatprep.subr.bf16.mxu1 %v695_v41 }
  0x55   :  { %198 = vmatpush1.bf16.msra.mxu0 %v682_v25  ;;  %623 = vmatpush3.bf16.msra.mxu1 %v696_v42 }
  0x56   :  { %624 = vmatprep.subr.bf16.mxu1 %v697_v43 }
  0x58   :  { %216 = vmatmul.mubr.bf16.vlgmr.msra.gmra.mrb[0].mxu0 %v71_v29 }
  0x59   :  { %225 = vmatprep.mubr.bf16.mxu0 %v800_v0  ;;  %625 = vmatpush3.bf16.msra.mxu1 %v698_v44 }
  0x60   :  { %226 = vmatmul.mubr.bf16.gmra.mrb[4].mxu0 %v72_v33 }
  0x61   :  { %235 = vmatprep.mubr.bf16.mxu0 %v800_v0 }
  0x68   :  { %236 = vmatmul.mubr.bf16.gmra.mrb[8].mxu0 %v73_v36 }
  0x69   :  { %245 = vmatprep.mubr.bf16.mxu0 %v800_v0 }
  0x70   :  { %246 = vmatmul.mubr.bf16.gmra.mrb[12].mxu0 %v74_v39 }
 0x12b   :  { %v217_v52 = vpop.f32.mrb[0].mxu0 }
 0x12c   :  { %v218_v53 = vadd.f32 %v217_v52, %v96_v50  ;;  %v219_v54 = vpop.f32.mrb[1].mxu0 }
 0x12d   :  { %v220_v55 = vadd.f32 %v219_v54, %v100_v51  ;;  %v221_v56 = vpop.f32.mrb[2].mxu0 }
 0x12e   :  { %v222_v57 = vadd.f32 %v221_v56, %v96_v50  ;;  %v223_v58 = vpop.f32.mrb[3].mxu0  ;;  %v256_v60 = vmax.f32 %v218_v53, 0.0 }
 0x12f   :  { %v224_v59 = vadd.f32 %v223_v58, %v100_v51  ;;  %v257_v62 = vmax.f32 %v220_v55, 0.0 }
 0x130   :  { %v258_v61 = vmax.f32 %v222_v57, 0.0 }
 0x131   :  { %v259_v63 = vmax.f32 %v224_v59, 0.0 }
 0x132   :  { %v272_v0 = vpack.c.bf16 %v258_v61, %v256_v60 }
 0x133   :  { %v227_v1 = vpop.f32.mrb[4].mxu0  ;;  %v273_v2 = vpack.c.bf16 %v259_v63, %v257_v62 }
 0x134   :  { %v228_v3 = vadd.f32 %v227_v1, %v96_v50  ;;  %v229_v4 = vpop.f32.mrb[5].mxu0 }
 0x135   :  { %v230_v5 = vadd.f32 %v229_v4, %v100_v51  ;;  %v231_v6 = vpop.f32.mrb[6].mxu0  ;;  %447 = vmatprep.mubr.bf16.mxu1 %v273_v2 }
 0x136   :  { %v232_v7 = vadd.f32 %v231_v6, %v96_v50  ;;  %v233_v8 = vpop.f32.mrb[7].mxu0  ;;  %448 = vmatmul.mubr.bf16.vlgmr.msra.gmra.mrb[0].mxu1 %v272_v0  ;;  %v260_v10 = vmax.f32 %v228_v3, 0.0 }
 0x137   :  { %v234_v9 = vadd.f32 %v233_v8, %v100_v51  ;;  %v261_v12 = vmax.f32 %v230_v5, 0.0 }
 0x138   :  { %v262_v11 = vmax.f32 %v232_v7, 0.0 }
 0x139   :  { %v263_v13 = vmax.f32 %v234_v9, 0.0 }
 0x13a   :  { %v274_v14 = vpack.c.bf16 %v262_v11, %v260_v10 }
 0x13b   :  { %v275_v15 = vpack.c.bf16 %v263_v13, %v261_v12  ;;  %v237_v16 = vpop.f32.mrb[8].mxu0 }
 0x13c   :  { %v238_v17 = vadd.f32 %v237_v16, %v96_v50  ;;  %v239_v18 = vpop.f32.mrb[9].mxu0 }
 0x13d   :  { %v240_v19 = vadd.f32 %v239_v18, %v100_v51  ;;  %v241_v20 = vpop.f32.mrb[10].mxu0  ;;  %455 = vmatprep.mubr.bf16.mxu1 %v275_v15 }
 0x13e   :  { %v242_v21 = vadd.f32 %v241_v20, %v96_v50  ;;  %v243_v22 = vpop.f32.mrb[11].mxu0  ;;  %456 = vmatmul.mubr.bf16.gmra.mrb[4].mxu1 %v274_v14  ;;  %v264_v24 = vmax.f32 %v238_v17, 0.0 }
 0x13f   :  { %v244_v23 = vadd.f32 %v243_v22, %v100_v51  ;;  %v265_v26 = vmax.f32 %v240_v19, 0.0 }
 0x140   :  { %v266_v25 = vmax.f32 %v242_v21, 0.0 }
 0x141   :  { %v267_v27 = vmax.f32 %v244_v23, 0.0 }
 0x142   :  { %v276_v28 = vpack.c.bf16 %v266_v25, %v264_v24 }
 0x143   :  { %v277_v29 = vpack.c.bf16 %v267_v27, %v265_v26  ;;  %v247_v30 = vpop.f32.mrb[12].mxu0 }
 0x144   :  { %v248_v31 = vadd.f32 %v247_v30, %v96_v50  ;;  %v249_v32 = vpop.f32.mrb[13].mxu0 }
 0x145   :  { %v250_v33 = vadd.f32 %v249_v32, %v100_v51  ;;  %v251_v34 = vpop.f32.mrb[14].mxu0  ;;  %463 = vmatprep.mubr.bf16.mxu1 %v277_v29 }
 0x146   :  { %v252_v35 = vadd.f32 %v251_v34, %v96_v50  ;;  %v253_v36 = vpop.f32.mrb[15].mxu0  ;;  %464 = vmatmul.mubr.bf16.gmra.mrb[8].mxu1 %v276_v28  ;;  %v268_v38 = vmax.f32 %v248_v31, 0.0 }
 0x147   :  { %v254_v37 = vadd.f32 %v253_v36, %v100_v51  ;;  %v269_v40 = vmax.f32 %v250_v33, 0.0 }
 0x148   :  { %v270_v39 = vmax.f32 %v252_v35, 0.0 }
 0x149   :  { %v271_v41 = vmax.f32 %v254_v37, 0.0 }
 0x14a   :  { %v278_v42 = vpack.c.bf16 %v270_v39, %v268_v38 }
 0x14b   :  { %v279_v43 = vpack.c.bf16 %v271_v41, %v269_v40 }
 0x14d   :  { %471 = vmatprep.mubr.bf16.mxu1 %v279_v43 }
 0x14e   :  { %472 = vmatmul.mubr.bf16.gmra.mrb[12].mxu1 %v278_v42 }
 0x209   :  { %v626_v44 = vpop.f32.mrb[0].mxu1 }
 0x20a   :  { %v627_v45 = vpop.f32.mrb[1].mxu1 }
 0x20b   :  { %v628_v46 = vadd.f32 %v627_v45, %v626_v44  ;;  %v629_v47 = vpop.f32.mrb[2].mxu1 }
 0x20c   :  { %v630_v49 = vpop.f32.mrb[3].mxu1 }
 0x20d   :  { %v631_v50 = vadd.f32 %v630_v49, %v629_v47  ;;  %v450_v52 = vadd.f32 %v628_v46, %v554_v48 }
 0x20f   :  { %v453_v51 = vadd.f32 %v631_v50, %v554_v48 }
 0x211   :  { %v590_v53 = vpack.c.bf16 %v453_v51, %v450_v52  ;;  %v632_v54 = vpop.f32.mrb[4].mxu1 }
 0x212   :  { %v633_v55 = vpop.f32.mrb[5].mxu1 }
 0x213   :  { %591 = vst [vmem:[#allocation8] sm:$0xff] %v590_v53   ;;  %v634_v56 = vadd.f32 %v633_v55, %v632_v54  ;;  %v635_v57 = vpop.f32.mrb[6].mxu1 }
 0x214   :  { %v636_v58 = vpop.f32.mrb[7].mxu1 }
 0x215   :  { %v637_v59 = vadd.f32 %v636_v58, %v635_v57  ;;  %v458_v60 = vadd.f32 %v634_v56, %v554_v48 }
 0x217   :  { %v461_v61 = vadd.f32 %v637_v59, %v554_v48 }
 0x219   :  { %v595_v62 = vpack.c.bf16 %v461_v61, %v458_v60  ;;  %v638_v63 = vpop.f32.mrb[8].mxu1 }
 0x21a   :  { %v639_v0 = vpop.f32.mrb[9].mxu1 }
 0x21b   :  { %607 = vst [vmem:[#allocation8 + $0x8] sm:$0xff] %v595_v62   ;;  %v640_v1 = vadd.f32 %v639_v0, %v638_v63  ;;  %v641_v2 = vpop.f32.mrb[10].mxu1 }
 0x21c   :  { %v642_v3 = vpop.f32.mrb[11].mxu1 }
 0x21d   :  { %v643_v4 = vadd.f32 %v642_v3, %v641_v2  ;;  %v466_v5 = vadd.f32 %v640_v1, %v554_v48 }
 0x21f   :  { %v469_v6 = vadd.f32 %v643_v4, %v554_v48 }
 0x221   :  { %v600_v7 = vpack.c.bf16 %v469_v6, %v466_v5  ;;  %v644_v8 = vpop.f32.mrb[12].mxu1 }
 0x222   :  { %v645_v9 = vpop.f32.mrb[13].mxu1 }
 0x223   :  { %608 = vst [vmem:[#allocation8 + $0x10] sm:$0xff] %v600_v7   ;;  %v646_v10 = vadd.f32 %v645_v9, %v644_v8  ;;  %v647_v11 = vpop.f32.mrb[14].mxu1 }
 0x224   :  { %v648_v12 = vpop.f32.mrb[15].mxu1 }
 0x225   :  { %v649_v13 = vadd.f32 %v648_v12, %v647_v11  ;;  %v474_v14 = vadd.f32 %v646_v10, %v554_v48 }
 0x227   :  { %v477_v15 = vadd.f32 %v649_v13, %v554_v48 }
 0x229   :  { %v605_v16 = vpack.c.bf16 %v477_v15, %v474_v14 }
 0x22b   :  { %609 = vst [vmem:[#allocation8 + $0x18] sm:$0xff] %v605_v16  }
 0x22c   :  { %776 = shalt.err (!%p773_p0)
}
 0x22d   :  { %s777_s12 = scalar_lea.hbm %s908_s5, 512 }
 0x22e   :  { %p778_p1 = scmp.ne.s32.totalorder %s908_s5, %s777_s12  ;;  %p781_p2 = scmp.lt.u32.totalorder %s777_s12, %s908_s5 }
 0x230   :  { %p783_p3 = pnand %p781_p2, %p778_p1 }
 0x232   :  { %786 = shalt.err (!%p783_p3)
}
 0x233   :  { %531 = dma.vmem_to_hbm [thread:$0]  %s526_s8, 512, %s908_s5, [#allocation4], %s798_s0, %s798_s0, %s799_s21  }
 0x234   :  { %791 = dma.done.wait [#allocation4], 512  }
 0x235   :  { %792 = vsyncadd [#allocation4], 4294966784 }
 0x236   :  { %535 = vsyncpa [#allocation3], 1 }
 0x237   :  { %536 = vsyncpa [#allocation6], 1 }
 0x238   :  { %537 = vsyncpa [#allocation4], 1 }

</bundles_post_ra>
